<compile_context>
chip_gen: v7x
topology: tpu7x:2x2x1
jax: 0.10.0
libtpu: 0.0.40
codegen_flags: <defaults>
</compile_context>

<pallas_src>
import functools

import jax
import jax.numpy as jnp
from jax.experimental import pallas as pl
from jax.experimental.pallas import tpu as pltpu


_LANE = 128
_TARGET_X_BYTES = 4 << 20        # aim for ~4 MiB of (logical) x per grid step
_VMEM_BUDGET_BYTES = 20 << 20    # conservative working-set budget (v5e..v7x)
_VMEM_LIMIT_BYTES = 32 << 20     # scoped VMEM request, valid on every generation
_NUM_SPLITS = 2                  # leading "parallel" axis: both v7x TensorCores


def _round_up(a: int, b: int) -> int:
    return (a + b - 1) // b * b


def _choose_tile_n(F: int, G: int) -> int:
    """Node-tile size: ~_TARGET_X_BYTES of x per step, bounded by VMEM."""
    f_pad = _round_up(F, _LANE)   # feature dim is lane-padded in VMEM
    g_pad = _round_up(G, 8)       # graph dim is sublane-padded
    # Conservative VMEM bytes per row of TN:
    #   2 double-buffered x tiles + masked-x temp (f32, lane padded)
    #   + 2 batch-id tiles (i32, sublane padded) + one-hot (f32) + iota (i32).
    per_row = 12 * f_pad + 64 + 8 * g_pad
    cap = max(_LANE, _VMEM_BUDGET_BYTES // per_row)
    target = max(_LANE, _TARGET_X_BYTES // (4 * F))
    tn = min(target, cap, 32768)
    return max(_LANE, tn // _LANE * _LANE)


def _make_segment_sum(N, F, G, TN, nb, bps, S):
    """pallas_call computing per-split, per-graph feature sums: (S, G, F)."""

    def kernel(x_ref, batch_ref, out_ref, acc_ref, gids_ref):
        i = pl.program_id(1)

        @pl.when(i == 0)
        def _():
            acc_ref[...] = jnp.zeros_like(acc_ref)
            # Graph-id iota built once per split, reused by every tile.
            gids_ref[...] = jax.lax.broadcasted_iota(jnp.int32, gids_ref.shape, 0)

        # Unclamped global block index. Ragged-tail rows (>= N) and whole
        # duplicate steps (whose block index was clamped in the index_map) are
        # zeroed explicitly: the out-of-bounds part of the x tile is
        # uninitialized VMEM, and 0 * NaN would poison the MXU accumulate.
        gb = pl.program_id(0) * bps + i
        valid_rows = N - gb * TN                          # may be <= 0 or >= TN
        row_ids = jax.lax.broadcasted_iota(jnp.int32, x_ref.shape, 0)
        x_tile = jnp.where(row_ids < valid_rows, x_ref[...], 0.0)

        # Per-tile (G, TN) one-hot feeding the MXU: segment-sum as a matmul.
        onehot = (batch_ref[...] == gids_ref[...]).astype(jnp.float32)
        acc_ref[...] += jnp.dot(onehot, x_tile, preferred_element_type=jnp.float32)

        @pl.when(i == bps - 1)
        def _():
            out_ref[...] = acc_ref[...].reshape(out_ref.shape)

    def x_map(c, i):       # clamp keeps every DMA window inside the array
        return (jnp.minimum(c * bps + i, nb - 1), 0)

    def batch_map(c, i):
        return (0, jnp.minimum(c * bps + i, nb - 1))

    return pl.pallas_call(
        kernel,
        out_shape=jax.ShapeDtypeStruct((S, G, F), jnp.float32),
        grid_spec=pltpu.PrefetchScalarGridSpec(
            num_scalar_prefetch=0,
            grid=(S, bps),
            in_specs=[
                pl.BlockSpec((TN, F), x_map),        # x streamed over nodes
                pl.BlockSpec((1, TN), batch_map),    # batch-id tile
            ],
            out_specs=pl.BlockSpec((1, G, F), lambda c, i: (c, 0, 0)),
            scratch_shapes=[
                pltpu.VMEM((G, F), jnp.float32),     # per-graph feature sums
                pltpu.VMEM((G, TN), jnp.int32),      # graph-id iota
            ],
        ),
        compiler_params=pltpu.CompilerParams(
            dimension_semantics=("parallel", "arbitrary"),
            vmem_limit_bytes=_VMEM_LIMIT_BYTES,
        ),
    )


@functools.partial(jax.jit, static_argnames=("num_graphs",))
def model_forward(x, edge_index, batch, weight, bias, num_graphs):
    """h = x @ weight + bias ; out = global_mean_pool(h, batch).

    x: (N, F) float, batch: (N,) int graph ids in [0, num_graphs),
    weight: (F, OUT), bias: (OUT,). Returns (num_graphs, OUT) float32.
    edge_index is accepted but unused (the reference forward never reads it).
    """
    del edge_index
    N, F = x.shape
    G = int(num_graphs)

    x32 = x.astype(jnp.float32)
    TN = _choose_tile_n(F, G)
    if N < TN:
        # Tiny input: pad to one aligned tile (cheap; avoids block > array).
        TN = _round_up(max(N, 1), _LANE)
        x32 = jnp.zeros((TN, F), jnp.float32).at[:N].set(x32)
        n_rows = TN
    else:
        n_rows = N                       # large input: x is NOT padded/copied

    nb = pl.cdiv(n_rows, TN)             # node tiles
    S = _NUM_SPLITS if nb >= _NUM_SPLITS else 1
    bps = pl.cdiv(nb, S)                 # tiles per split

    # Only the tiny batch-id row is padded; sentinel == G matches no graph.
    batch_i32 = batch.astype(jnp.int32)
    batch_p = jnp.full((1, nb * TN), G, jnp.int32).at[0, :N].set(batch_i32)

    partial = _make_segment_sum(N, F, G, TN, nb, bps, S)(x32, batch_p)

    # Tiny epilogue in plain JAX: combine core-splits, mean, project, bias.
    counts = jnp.zeros((G,), jnp.float32).at[batch_i32].add(1.0)
    sums = jnp.sum(partial, axis=0)                              # (G, F)
    mean = sums / jnp.maximum(counts, 1.0)[:, None]
    out = mean @ weight.astype(jnp.float32) + bias.astype(jnp.float32)[None, :]
    # Empty graphs -> exactly 0 (PyG scatter-mean semantics), not bias.
    return jnp.where(counts[:, None] > 0, out, 0.0)


if __name__ == "__main__":
    key = jax.random.PRNGKey(0)
    k_x, k_w, k_b, k_x2 = jax.random.split(key, 4)

    F, OUT = 32, 2
    weight = jax.random.normal(k_w, (F, OUT), jnp.float32) * (1.0 / jnp.sqrt(F))
    bias = jax.random.normal(k_b, (OUT,), jnp.float32) * 0.1

    # --- Small test (module's toy usage) ---
    N, G = 8, 2
    x = jax.random.normal(k_x, (N, F), jnp.float32)
    batch = jnp.array([0, 0, 0, 0, 1, 1, 1, 1], jnp.int32)
    edge_index = jnp.array([[0, 1, 2, 3], [1, 2, 3, 0]], jnp.int32)  # unused

    out = jax.block_until_ready(
        model_forward(x, edge_index, batch, weight, bias, num_graphs=G))
    h_ref = x @ weight + bias
    ref = jnp.stack([h_ref[batch == g].mean(axis=0) for g in range(G)], axis=0)
    assert out.shape == (G, OUT)
    assert jnp.allclose(out, ref, atol=1e-5, rtol=1e-5), (out, ref)

    # --- Larger test: exercises the no-pad streaming path (multiple tiles,
    #     2-way core split, clamped duplicate step, ragged tail, empty graph).
    G2 = 4
    sizes = (25_000, 20_000, 15_000, 0)          # graph 3 is empty
    N2 = sum(sizes)
    x2 = jax.random.normal(k_x2, (N2, F), jnp.float32)
    batch2 = jnp.concatenate(
        [jnp.full((s,), g, jnp.int32) for g, s in enumerate(sizes)])
    out2 = jax.block_until_ready(
        model_forward(x2, edge_index, batch2, weight, bias, num_graphs=G2))

    h2 = x2 @ weight + bias
    sums2 = jnp.zeros((G2, OUT), jnp.float32).at[batch2].add(h2)
    cnts2 = jnp.zeros((G2,), jnp.float32).at[batch2].add(1.0)
    ref2 = jnp.where(cnts2[:, None] > 0,
                     sums2 / jnp.maximum(cnts2, 1.0)[:, None], 0.0)
    assert out2.shape == (G2, OUT)
    assert jnp.allclose(out2, ref2, atol=1e-4, rtol=1e-4), (out2, ref2)

    print("KERNEL_OK")
</pallas_src>

<mosaic_0001>
module attributes {stable_mosaic.version = 11 : i64} {
  func.func @kernel(%arg0: i32, %arg1: i32, %arg2: memref<128x32xf32, #tpu.memory_space<vmem>>, %arg3: memref<1x128xi32, #tpu.memory_space<vmem>>, %arg4: memref<1x2x32xf32, #tpu.memory_space<vmem>>, %arg5: memref<2x32xf32, #tpu.memory_space<vmem>>, %arg6: memref<2x128xi32, #tpu.memory_space<vmem>>) attributes {dimension_semantics = [#tpu.dimension_semantics<parallel>, #tpu.dimension_semantics<arbitrary>], iteration_bounds = array<i64: 1, 1>, scalar_prefetch = 0 : i64, scratch_operands = 2 : i64, tpu.core_type = #tpu.core_type<tc>, window_params = [{transform_indices = @transform_0, window_bounds = array<i64: 128, 32>}, {transform_indices = @transform_1, window_bounds = array<i64: 1, 128>}, {transform_indices = @transform_2, window_bounds = array<i64: 1, 2, 32>}]} {
    %c0_i32 = arith.constant 0 : i32
    %0 = arith.cmpi eq, %arg1, %c0_i32 : i32
    %1 = arith.extui %0 : i1 to i32
    %c0_i32_0 = arith.constant 0 : i32
    %2 = arith.cmpi ne, %1, %c0_i32_0 : i32
    scf.if %2 {
      %cst_13 = arith.constant 0.000000e+00 : f32
      %26 = vector.broadcast %cst_13 : f32 to vector<2x32xf32>
      %c0_14 = arith.constant 0 : index
      %c0_15 = arith.constant 0 : index
      %27 = vector.load %arg5[%c0_14, %c0_15] : memref<2x32xf32, #tpu.memory_space<vmem>>, vector<2x32xf32>
      tpu.vector_store %arg5[%c0_14, %c0_15], %26 {strides = array<i32>} : memref<2x32xf32, #tpu.memory_space<vmem>>, vector<2x32xf32>,
      %28 = tpu.iota {dimensions = array<i32: 0>} : vector<2x128xi32>
      %c0_16 = arith.constant 0 : index
      %c0_17 = arith.constant 0 : index
      %29 = vector.load %arg6[%c0_16, %c0_17] : memref<2x128xi32, #tpu.memory_space<vmem>>, vector<2x128xi32>
      tpu.vector_store %arg6[%c0_16, %c0_17], %28 {strides = array<i32>} : memref<2x128xi32, #tpu.memory_space<vmem>>, vector<2x128xi32>,
    } else {
    }
    %c1_i32 = arith.constant 1 : i32
    %3 = arith.muli %arg0, %c1_i32 : i32
    %4 = arith.addi %3, %arg1 : i32
    %c128_i32 = arith.constant 128 : i32
    %5 = arith.muli %4, %c128_i32 : i32
    %c8_i32 = arith.constant 8 : i32
    %6 = arith.subi %c8_i32, %5 : i32
    %7 = tpu.iota {dimensions = array<i32: 0>} : vector<128x32xi32>
    %8 = vector.broadcast %6 : i32 to vector<128x32xi32>
    %9 = arith.cmpi slt, %7, %8 : vector<128x32xi32>
    %c0 = arith.constant 0 : index
    %c0_1 = arith.constant 0 : index
    %10 = vector.load %arg2[%c0, %c0_1] : memref<128x32xf32, #tpu.memory_space<vmem>>, vector<128x32xf32>
    %cst = arith.constant 0.000000e+00 : f32
    %11 = vector.broadcast %cst : f32 to vector<128x32xf32>
    %12 = arith.select %9, %10, %11 : vector<128x32xi1>, vector<128x32xf32>
    %c0_2 = arith.constant 0 : index
    %c0_3 = arith.constant 0 : index
    %13 = vector.load %arg3[%c0_2, %c0_3] : memref<1x128xi32, #tpu.memory_space<vmem>>, vector<1x128xi32>
    %c0_4 = arith.constant 0 : index
    %c0_5 = arith.constant 0 : index
    %14 = vector.load %arg6[%c0_4, %c0_5] : memref<2x128xi32, #tpu.memory_space<vmem>>, vector<2x128xi32>
    %15 = vector.broadcast %13 : vector<1x128xi32> to vector<2x128xi32>
    %16 = arith.cmpi eq, %15, %14 : vector<2x128xi32>
    %17 = arith.extui %16 : vector<2x128xi1> to vector<2x128xi32>
    %18 = arith.sitofp %17 : vector<2x128xi32> to vector<2x128xf32>
    %c0_6 = arith.constant 0 : index
    %c0_7 = arith.constant 0 : index
    %19 = vector.load %arg5[%c0_6, %c0_7] : memref<2x32xf32, #tpu.memory_space<vmem>>, vector<2x32xf32>
    %cst_8 = arith.constant dense<0.000000e+00> : vector<2x32xf32>
    %20 = tpu.matmul %18, %12, %cst_8 {dimension_numbers = #tpu.dot_dimension_numbers<[1], [0], [0], [1], [0, 0, 1, 1], [], []>} : vector<2x128xf32>, vector<128x32xf32>, vector<2x32xf32> -> vector<2x32xf32>
    %21 = arith.addf %19, %20 : vector<2x32xf32>
    %c0_9 = arith.constant 0 : index
    %c0_10 = arith.constant 0 : index
    %22 = vector.load %arg5[%c0_9, %c0_10] : memref<2x32xf32, #tpu.memory_space<vmem>>, vector<2x32xf32>
    tpu.vector_store %arg5[%c0_9, %c0_10], %21 {strides = array<i32>} : memref<2x32xf32, #tpu.memory_space<vmem>>, vector<2x32xf32>,
    %c0_i32_11 = arith.constant 0 : i32
    %23 = arith.cmpi eq, %arg1, %c0_i32_11 : i32
    %24 = arith.extui %23 : i1 to i32
    %c0_i32_12 = arith.constant 0 : i32
    %25 = arith.cmpi ne, %24, %c0_i32_12 : i32
    scf.if %25 {
      %c0_13 = arith.constant 0 : index
      %c0_14 = arith.constant 0 : index
      %26 = vector.load %arg5[%c0_13, %c0_14] : memref<2x32xf32, #tpu.memory_space<vmem>>, vector<2x32xf32>
      %27 = vector.shape_cast %26 : vector<2x32xf32> to vector<1x2x32xf32>
      %c0_15 = arith.constant 0 : index
      %c0_16 = arith.constant 0 : index
      %c0_17 = arith.constant 0 : index
      %28 = vector.load %arg4[%c0_15, %c0_16, %c0_17] : memref<1x2x32xf32, #tpu.memory_space<vmem>>, vector<1x2x32xf32>
      tpu.vector_store %arg4[%c0_15, %c0_16, %c0_17], %27 {strides = array<i32>} : memref<1x2x32xf32, #tpu.memory_space<vmem>>, vector<1x2x32xf32>,
    } else {
    }
    return
  }
  func.func @transform_0(%arg0: i32, %arg1: i32) -> (i32, i32) {
    %c1_i32 = arith.constant 1 : i32
    %0 = arith.muli %arg0, %c1_i32 : i32
    %1 = arith.addi %0, %arg1 : i32
    %c0_i32 = arith.constant 0 : i32
    %2 = arith.minsi %1, %c0_i32 : i32
    %c0_i32_0 = arith.constant 0 : i32
    %c0_i32_1 = arith.constant 0 : i32
    return %2, %c0_i32_0 : i32, i32
  }
  func.func @transform_1(%arg0: i32, %arg1: i32) -> (i32, i32) {
    %c1_i32 = arith.constant 1 : i32
    %0 = arith.muli %arg0, %c1_i32 : i32
    %1 = arith.addi %0, %arg1 : i32
    %c0_i32 = arith.constant 0 : i32
    %2 = arith.minsi %1, %c0_i32 : i32
    %c0_i32_0 = arith.constant 0 : i32
    %c0_i32_1 = arith.constant 0 : i32
    return %c0_i32_0, %2 : i32, i32
  }
  func.func @transform_2(%arg0: i32, %arg1: i32) -> (i32, i32, i32) {
    %c0_i32 = arith.constant 0 : i32
    %c0_i32_0 = arith.constant 0 : i32
    %c0_i32_1 = arith.constant 0 : i32
    return %arg0, %c0_i32, %c0_i32_0 : i32, i32, i32
  }
}

</mosaic_0001>

<bundles_post_ra>
// kernel: model_forward.1
= control target key start
LH: loop header
LB: loop body
LE: loop exit
PB: predicated region body
PF: predicated region fallthrough
CT: control target
= control target key end

     0   :  { %vm71_vm0 = vcmask 254976   ;;  %v73_v0 = vlaneseq  ;;  %v259_v1 = vmov 0.0   ;;  %vm260_vm1 = vmmov 0   ;;  %s289_s0 = inlined_call_operand.vmem [shape: f32[128,32], index: 0, kind: input, shape index: {}]   ;;  %s290_s1 = inlined_call_operand.vmem [shape: s32[1,128], index: 1, kind: input, shape index: {}]   ;;  %s291_s2 = inlined_call_operand.vmem [shape: f32[1,2,32], index: 2, kind: output, shape index: {}]  }
   0x1   :  { %72 = vst.msk [vmem:[#allocation2] sm:$0x3] %vm71_vm0, %v259_v1  ;;  %251 = vmatprep.subr.mxu0 %v259_v1  ;;  %v113_v2 = vld [vmem:[%s289_s0] sm:$0xff]  ;;  %253 = vmatprep.mubr.msk.f32.mxu0 %vm260_vm1, %v259_v1  ;;  %v261_v6 = vmov 1.0  }
   0x2   :  { %252 = vmatpush3.msra.mxu0 %v113_v2  ;;  %v74_v3 = vshrl.u32 %v73_v0, 7  ;;  %v246_v4 = vld [vmem:[%s290_s1] ss:$0 sm:$0xff] }
   0x4   :  { %75 = vst [vmem:[#allocation3] sm:$0x3] %v74_v3 }
   0x8   :  { %v154_v7 = vld [vmem:[#allocation2] sm:$0x3] }
   0xb   :  { %v146_v5 = vld [vmem:[#allocation3] sm:$0x3] }
   0xc   :  { %vm151_vm2 = vcmp.eq.s32.totalorder %v246_v4, %v146_v5 }
   0xd   :  { %254 = vmatmul.mubr.msk.f32.vlgmr.msra.gmra.mrb[0].mxu0 %vm151_vm2, %v261_v6 }
  0xe0   :  { %v221_v8 = vpop.f32.mrb[0].mxu0 }
  0xe1   :  { %v225_v9 = vadd.f32 %v221_v8, %v154_v7  ;;  %v255_v10 = vpop.f32.mrb[1].mxu0 }
  0xe3   :  { %227 = vst.msk [vmem:[#allocation2] sm:$0x3] %vm71_vm0, %v225_v9 }
  0xea   :  { %v231_v11 = vld [vmem:[#allocation2] sm:$0x3] }
  0xeb   :  { %232 = vst.msk [vmem:[%s291_s2] sm:$0x3] %vm71_vm0, %v231_v11 }

</bundles_post_ra>
